<compile_context>
chip_gen: v6e
topology: v6e:2x2x1
jax: 0.10.0
libtpu: 0.0.40
codegen_flags: <defaults>
</compile_context>

<pallas_src>
import jax
import jax.numpy as jnp
from jax.experimental import pallas as pl
from jax.experimental.pallas import tpu as pltpu

# (in, out) sizes for fc1..fc8, matching the PyTorch module.
LAYER_DIMS = [(10, 16), (16, 32), (32, 64), (64, 128),
              (128, 64), (64, 32), (32, 16), (16, 10)]
NUM_LAYERS = len(LAYER_DIMS)
PAD = 128                      # intra-kernel lane width for every layer (zero-padded, exact)
IN_PAD = 16                    # HBM-facing input lane width  (10 real features + 6 zero cols)
OUT_PAD = 16                   # HBM-facing output lane width (10 real outputs + 6 zero cols)
NEG_SLOPE = 0.01               # default negative_slope of F.leaky_relu
OPERAND_DTYPE = jnp.bfloat16   # MXU operand / weight storage dtype (f32 accumulation)


def _round_up(x, m):
    return ((x + m - 1) // m) * m


def _leaky_relu(x):
    return jnp.where(x > 0, x, NEG_SLOPE * x)


# ----------------------------------------------------------------------------- kernel ----
def _fcnet_kernel(x_ref, w_ref, b_ref, o_ref):
    # x_ref: (tm, 16)  f32   input rows, features zero-padded 10 -> 16
    # w_ref: (8, 128, 128)   packed zero-padded weights (bf16), layout (in, out)
    # b_ref: (8, 1, 128) f32 packed zero-padded biases
    # o_ref: (tm, 16)  f32   fc8's real columns (cols 10..15 are exact zeros)
    odt = w_ref.dtype  # MXU operand dtype (bf16 by default; f32 if f32 weights are packed)

    # fc1: only the first 16 K-rows of the padded weight can be nonzero, so slicing the
    # weight fuses the 16 -> 128 lane widening into the matmul (zero padding is exact).
    z = jnp.dot(x_ref[...].astype(odt), w_ref[0, :IN_PAD, :],
                preferred_element_type=jnp.float32)
    z = _leaky_relu(z + b_ref[0])

    # fc2 .. fc7: lane-dense 128x128 MXU matmuls; activation chained as a value
    # (no scratch round-trip).  Dropout is identity in eval mode.
    for li in range(1, NUM_LAYERS - 1):
        z = jnp.dot(z.astype(odt), w_ref[li], preferred_element_type=jnp.float32)
        z = _leaky_relu(z + b_ref[li])

    # fc8: no activation; store only the real output columns (narrow HBM write).
    z = jnp.dot(z.astype(odt), w_ref[NUM_LAYERS - 1],
                preferred_element_type=jnp.float32)
    z = z + b_ref[NUM_LAYERS - 1]
    o_ref[...] = z[:, :OUT_PAD]


# --------------------------------------------------------------------------- parameters --
def init_params(key):
    """nn.Linear-style uniform(-1/sqrt(fan_in), 1/sqrt(fan_in)) init, f32."""
    params = []
    for (fan_in, fan_out) in LAYER_DIMS:
        key, kw, kb = jax.random.split(key, 3)
        bound = 1.0 / jnp.sqrt(jnp.float32(fan_in))
        w = jax.random.uniform(kw, (fan_in, fan_out), jnp.float32, -bound, bound)
        b = jax.random.uniform(kb, (fan_out,), jnp.float32, -bound, bound)
        params.append((w, b))
    return params


def pack_params(params, operand_dtype=OPERAND_DTYPE):
    """Pack 8 (w, b) pairs into one zero-padded (8,128,128) weight tensor (operand_dtype)
    and one (8,1,128) f32 bias tensor.  Use operand_dtype=jnp.float32 for strict f32 parity."""
    w_packed = jnp.zeros((NUM_LAYERS, PAD, PAD), operand_dtype)
    b_packed = jnp.zeros((NUM_LAYERS, 1, PAD), jnp.float32)
    for li, (w, b) in enumerate(params):
        fi, fo = w.shape
        w_packed = w_packed.at[li, :fi, :fo].set(w.astype(operand_dtype))
        b_packed = b_packed.at[li, 0, :fo].set(b.astype(jnp.float32))
    return w_packed, b_packed


# ------------------------------------------------------------------------------ tiling ---
def _choose_tiling(batch, block_m):
    """Pick (tm, b_pad, n_tiles) so padding waste is < 8 rows/tile and, whenever the batch
    allows it, there are >= 2 grid steps so v7x's second TensorCore isn't idle."""
    n_tiles = max(1, pl.cdiv(batch, block_m))
    if batch >= 16:
        n_tiles = max(n_tiles, 2)
    tm = _round_up(pl.cdiv(batch, n_tiles), 8)
    return tm, tm * n_tiles, n_tiles


# ------------------------------------------------------------------------------ wrapper --
def deeper_fcnet_forward(x, w_packed, b_packed, *, block_m=2048):
    """x: (B, 10) f32 -> (B, 10) f32."""
    B, f_in = x.shape
    f_out = LAYER_DIMS[-1][1]
    tm, b_pad, n_tiles = _choose_tiling(B, block_m)

    # Pad only the batch (to a tile multiple) and the features 10 -> 16 (tiny slab);
    # the 16 -> 128 lane widening happens inside the kernel's first matmul.
    x_pad = jnp.zeros((b_pad, IN_PAD), jnp.float32).at[:B, :f_in].set(x)

    flops = 2 * b_pad * (IN_PAD * PAD + (NUM_LAYERS - 1) * PAD * PAD)
    bytes_accessed = int(
        b_pad * IN_PAD * 4 + b_pad * OUT_PAD * 4
        + w_packed.size * w_packed.dtype.itemsize + b_packed.size * 4)

    out = pl.pallas_call(
        _fcnet_kernel,
        out_shape=jax.ShapeDtypeStruct((b_pad, OUT_PAD), jnp.float32),
        grid_spec=pltpu.PrefetchScalarGridSpec(
            num_scalar_prefetch=0,
            grid=(n_tiles,),
            in_specs=[
                # activations: batch-tiled, lane-narrow
                pl.BlockSpec((tm, IN_PAD), lambda i: (i, 0)),
                # weights / biases: grid-invariant residents (DMA'd once)
                pl.BlockSpec((NUM_LAYERS, PAD, PAD), lambda i: (0, 0, 0)),
                pl.BlockSpec((NUM_LAYERS, 1, PAD), lambda i: (0, 0, 0)),
            ],
            out_specs=pl.BlockSpec((tm, OUT_PAD), lambda i: (i, 0)),
        ),
        compiler_params=pltpu.CompilerParams(
            dimension_semantics=("parallel",),
            vmem_limit_bytes=32 * 1024 * 1024,
        ),
        cost_estimate=pl.CostEstimate(
            flops=flops, transcendentals=0, bytes_accessed=bytes_accessed),
    )(x_pad, w_packed, b_packed)

    return out[:B, :f_out]


# ---------------------------------------------------------------------------- reference --
def reference_forward(x, params, operand_dtype=OPERAND_DTYPE):
    """Pure-JAX reference following the same dtype path as the kernel
    (bf16 MXU operands, f32 accumulation, f32 bias add + leaky_relu)."""
    h = x.astype(jnp.float32)
    for li, (w, b) in enumerate(params):
        z = jnp.dot(h.astype(operand_dtype), w.astype(operand_dtype),
                    preferred_element_type=jnp.float32) + b.reshape(1, -1)
        if li != len(params) - 1:
            z = _leaky_relu(z)
        h = z
    return h


if __name__ == "__main__":
    key = jax.random.PRNGKey(0)
    key, kx = jax.random.split(key)

    B = 8
    x = jax.random.normal(kx, (B, 10), jnp.float32)
    params = init_params(key)
    w_packed, b_packed = pack_params(params)

    out = jax.block_until_ready(deeper_fcnet_forward(x, w_packed, b_packed))
    ref = reference_forward(x, params)
    assert out.shape == (B, 10), out.shape
    assert jnp.allclose(out, ref, atol=1e-4, rtol=1e-3), "mismatch vs JAX reference (B=8)"

    # Exercise the multi-step grid (>= 2 tiles for the parallel batch axis) and a batch
    # that is not a multiple of the tile (padded tail rows).
    B2 = 300
    x2 = jax.random.normal(jax.random.PRNGKey(1), (B2, 10), jnp.float32)
    out2 = jax.block_until_ready(
        deeper_fcnet_forward(x2, w_packed, b_packed, block_m=128))
    ref2 = reference_forward(x2, params)
    assert out2.shape == (B2, 10), out2.shape
    assert jnp.allclose(out2, ref2, atol=1e-4, rtol=1e-3), "mismatch vs JAX reference (B=300)"

    print("KERNEL_OK")
</pallas_src>

<mosaic_0001>
module attributes {stable_mosaic.version = 11 : i64} {
  func.func @_fcnet_kernel(%arg0: i32, %arg1: memref<8x16xf32, #tpu.memory_space<vmem>>, %arg2: memref<8x128x128xbf16, #tpu.memory_space<vmem>>, %arg3: memref<8x1x128xf32, #tpu.memory_space<vmem>>, %arg4: memref<8x16xf32, #tpu.memory_space<vmem>>) attributes {dimension_semantics = [#tpu.dimension_semantics<parallel>], iteration_bounds = array<i64: 1>, scalar_prefetch = 0 : i64, scratch_operands = 0 : i64, tpu.core_type = #tpu.core_type<tc>, window_params = [{transform_indices = @transform_0, window_bounds = array<i64: 8, 16>}, {pipeline_mode = #tpu.pipeline_mode<synchronous>, transform_indices = @transform_1, window_bounds = array<i64: 8, 128, 128>}, {pipeline_mode = #tpu.pipeline_mode<synchronous>, transform_indices = @transform_2, window_bounds = array<i64: 8, 1, 128>}, {transform_indices = @transform_3, window_bounds = array<i64: 8, 16>}]} {
    %c0 = arith.constant 0 : index
    %c0_0 = arith.constant 0 : index
    %0 = vector.load %arg1[%c0, %c0_0] : memref<8x16xf32, #tpu.memory_space<vmem>>, vector<8x16xf32>
    %1 = arith.truncf %0 : vector<8x16xf32> to vector<8x16xbf16>
    %c0_1 = arith.constant 0 : index
    %c0_2 = arith.constant 0 : index
    %c0_3 = arith.constant 0 : index
    %2 = vector.load %arg2[%c0_1, %c0_2, %c0_3] : memref<8x128x128xbf16, #tpu.memory_space<vmem>>, vector<1x16x128xbf16>
    %3 = vector.shape_cast %2 : vector<1x16x128xbf16> to vector<16x128xbf16>
    %cst = arith.constant dense<0.000000e+00> : vector<8x128xf32>
    %4 = tpu.matmul %1, %3, %cst {dimension_numbers = #tpu.dot_dimension_numbers<[1], [0], [0], [1], [0, 0, 1, 1], [], []>} : vector<8x16xbf16>, vector<16x128xbf16>, vector<8x128xf32> -> vector<8x128xf32>
    %c0_4 = arith.constant 0 : index
    %c0_5 = arith.constant 0 : index
    %c0_6 = arith.constant 0 : index
    %5 = vector.load %arg3[%c0_4, %c0_5, %c0_6] : memref<8x1x128xf32, #tpu.memory_space<vmem>>, vector<1x1x128xf32>
    %6 = vector.shape_cast %5 : vector<1x1x128xf32> to vector<1x128xf32>
    %7 = vector.broadcast %6 : vector<1x128xf32> to vector<8x128xf32>
    %8 = arith.addf %4, %7 : vector<8x128xf32>
    %cst_7 = arith.constant 0.000000e+00 : f32
    %9 = vector.broadcast %cst_7 : f32 to vector<8x128xf32>
    %10 = arith.cmpf ogt, %8, %9 : vector<8x128xf32>
    %cst_8 = arith.constant 0.00999999977 : f32
    %11 = vector.broadcast %cst_8 : f32 to vector<8x128xf32>
    %12 = arith.mulf %11, %8 : vector<8x128xf32>
    %13 = arith.select %10, %8, %12 : vector<8x128xi1>, vector<8x128xf32>
    %14 = arith.truncf %13 : vector<8x128xf32> to vector<8x128xbf16>
    %c1 = arith.constant 1 : index
    %c0_9 = arith.constant 0 : index
    %c0_10 = arith.constant 0 : index
    %15 = vector.load %arg2[%c1, %c0_9, %c0_10] : memref<8x128x128xbf16, #tpu.memory_space<vmem>>, vector<1x128x128xbf16>
    %16 = vector.shape_cast %15 : vector<1x128x128xbf16> to vector<128x128xbf16>
    %cst_11 = arith.constant dense<0.000000e+00> : vector<8x128xf32>
    %17 = tpu.matmul %14, %16, %cst_11 {dimension_numbers = #tpu.dot_dimension_numbers<[1], [0], [0], [1], [0, 0, 1, 1], [], []>} : vector<8x128xbf16>, vector<128x128xbf16>, vector<8x128xf32> -> vector<8x128xf32>
    %c1_12 = arith.constant 1 : index
    %c0_13 = arith.constant 0 : index
    %c0_14 = arith.constant 0 : index
    %18 = vector.load %arg3[%c1_12, %c0_13, %c0_14] : memref<8x1x128xf32, #tpu.memory_space<vmem>>, vector<1x1x128xf32>
    %19 = vector.shape_cast %18 : vector<1x1x128xf32> to vector<1x128xf32>
    %20 = vector.broadcast %19 : vector<1x128xf32> to vector<8x128xf32>
    %21 = arith.addf %17, %20 : vector<8x128xf32>
    %cst_15 = arith.constant 0.000000e+00 : f32
    %22 = vector.broadcast %cst_15 : f32 to vector<8x128xf32>
    %23 = arith.cmpf ogt, %21, %22 : vector<8x128xf32>
    %cst_16 = arith.constant 0.00999999977 : f32
    %24 = vector.broadcast %cst_16 : f32 to vector<8x128xf32>
    %25 = arith.mulf %24, %21 : vector<8x128xf32>
    %26 = arith.select %23, %21, %25 : vector<8x128xi1>, vector<8x128xf32>
    %27 = arith.truncf %26 : vector<8x128xf32> to vector<8x128xbf16>
    %c2 = arith.constant 2 : index
    %c0_17 = arith.constant 0 : index
    %c0_18 = arith.constant 0 : index
    %28 = vector.load %arg2[%c2, %c0_17, %c0_18] : memref<8x128x128xbf16, #tpu.memory_space<vmem>>, vector<1x128x128xbf16>
    %29 = vector.shape_cast %28 : vector<1x128x128xbf16> to vector<128x128xbf16>
    %cst_19 = arith.constant dense<0.000000e+00> : vector<8x128xf32>
    %30 = tpu.matmul %27, %29, %cst_19 {dimension_numbers = #tpu.dot_dimension_numbers<[1], [0], [0], [1], [0, 0, 1, 1], [], []>} : vector<8x128xbf16>, vector<128x128xbf16>, vector<8x128xf32> -> vector<8x128xf32>
    %c2_20 = arith.constant 2 : index
    %c0_21 = arith.constant 0 : index
    %c0_22 = arith.constant 0 : index
    %31 = vector.load %arg3[%c2_20, %c0_21, %c0_22] : memref<8x1x128xf32, #tpu.memory_space<vmem>>, vector<1x1x128xf32>
    %32 = vector.shape_cast %31 : vector<1x1x128xf32> to vector<1x128xf32>
    %33 = vector.broadcast %32 : vector<1x128xf32> to vector<8x128xf32>
    %34 = arith.addf %30, %33 : vector<8x128xf32>
    %cst_23 = arith.constant 0.000000e+00 : f32
    %35 = vector.broadcast %cst_23 : f32 to vector<8x128xf32>
    %36 = arith.cmpf ogt, %34, %35 : vector<8x128xf32>
    %cst_24 = arith.constant 0.00999999977 : f32
    %37 = vector.broadcast %cst_24 : f32 to vector<8x128xf32>
    %38 = arith.mulf %37, %34 : vector<8x128xf32>
    %39 = arith.select %36, %34, %38 : vector<8x128xi1>, vector<8x128xf32>
    %40 = arith.truncf %39 : vector<8x128xf32> to vector<8x128xbf16>
    %c3 = arith.constant 3 : index
    %c0_25 = arith.constant 0 : index
    %c0_26 = arith.constant 0 : index
    %41 = vector.load %arg2[%c3, %c0_25, %c0_26] : memref<8x128x128xbf16, #tpu.memory_space<vmem>>, vector<1x128x128xbf16>
    %42 = vector.shape_cast %41 : vector<1x128x128xbf16> to vector<128x128xbf16>
    %cst_27 = arith.constant dense<0.000000e+00> : vector<8x128xf32>
    %43 = tpu.matmul %40, %42, %cst_27 {dimension_numbers = #tpu.dot_dimension_numbers<[1], [0], [0], [1], [0, 0, 1, 1], [], []>} : vector<8x128xbf16>, vector<128x128xbf16>, vector<8x128xf32> -> vector<8x128xf32>
    %c3_28 = arith.constant 3 : index
    %c0_29 = arith.constant 0 : index
    %c0_30 = arith.constant 0 : index
    %44 = vector.load %arg3[%c3_28, %c0_29, %c0_30] : memref<8x1x128xf32, #tpu.memory_space<vmem>>, vector<1x1x128xf32>
    %45 = vector.shape_cast %44 : vector<1x1x128xf32> to vector<1x128xf32>
    %46 = vector.broadcast %45 : vector<1x128xf32> to vector<8x128xf32>
    %47 = arith.addf %43, %46 : vector<8x128xf32>
    %cst_31 = arith.constant 0.000000e+00 : f32
    %48 = vector.broadcast %cst_31 : f32 to vector<8x128xf32>
    %49 = arith.cmpf ogt, %47, %48 : vector<8x128xf32>
    %cst_32 = arith.constant 0.00999999977 : f32
    %50 = vector.broadcast %cst_32 : f32 to vector<8x128xf32>
    %51 = arith.mulf %50, %47 : vector<8x128xf32>
    %52 = arith.select %49, %47, %51 : vector<8x128xi1>, vector<8x128xf32>
    %53 = arith.truncf %52 : vector<8x128xf32> to vector<8x128xbf16>
    %c4 = arith.constant 4 : index
    %c0_33 = arith.constant 0 : index
    %c0_34 = arith.constant 0 : index
    %54 = vector.load %arg2[%c4, %c0_33, %c0_34] : memref<8x128x128xbf16, #tpu.memory_space<vmem>>, vector<1x128x128xbf16>
    %55 = vector.shape_cast %54 : vector<1x128x128xbf16> to vector<128x128xbf16>
    %cst_35 = arith.constant dense<0.000000e+00> : vector<8x128xf32>
    %56 = tpu.matmul %53, %55, %cst_35 {dimension_numbers = #tpu.dot_dimension_numbers<[1], [0], [0], [1], [0, 0, 1, 1], [], []>} : vector<8x128xbf16>, vector<128x128xbf16>, vector<8x128xf32> -> vector<8x128xf32>
    %c4_36 = arith.constant 4 : index
    %c0_37 = arith.constant 0 : index
    %c0_38 = arith.constant 0 : index
    %57 = vector.load %arg3[%c4_36, %c0_37, %c0_38] : memref<8x1x128xf32, #tpu.memory_space<vmem>>, vector<1x1x128xf32>
    %58 = vector.shape_cast %57 : vector<1x1x128xf32> to vector<1x128xf32>
    %59 = vector.broadcast %58 : vector<1x128xf32> to vector<8x128xf32>
    %60 = arith.addf %56, %59 : vector<8x128xf32>
    %cst_39 = arith.constant 0.000000e+00 : f32
    %61 = vector.broadcast %cst_39 : f32 to vector<8x128xf32>
    %62 = arith.cmpf ogt, %60, %61 : vector<8x128xf32>
    %cst_40 = arith.constant 0.00999999977 : f32
    %63 = vector.broadcast %cst_40 : f32 to vector<8x128xf32>
    %64 = arith.mulf %63, %60 : vector<8x128xf32>
    %65 = arith.select %62, %60, %64 : vector<8x128xi1>, vector<8x128xf32>
    %66 = arith.truncf %65 : vector<8x128xf32> to vector<8x128xbf16>
    %c5 = arith.constant 5 : index
    %c0_41 = arith.constant 0 : index
    %c0_42 = arith.constant 0 : index
    %67 = vector.load %arg2[%c5, %c0_41, %c0_42] : memref<8x128x128xbf16, #tpu.memory_space<vmem>>, vector<1x128x128xbf16>
    %68 = vector.shape_cast %67 : vector<1x128x128xbf16> to vector<128x128xbf16>
    %cst_43 = arith.constant dense<0.000000e+00> : vector<8x128xf32>
    %69 = tpu.matmul %66, %68, %cst_43 {dimension_numbers = #tpu.dot_dimension_numbers<[1], [0], [0], [1], [0, 0, 1, 1], [], []>} : vector<8x128xbf16>, vector<128x128xbf16>, vector<8x128xf32> -> vector<8x128xf32>
    %c5_44 = arith.constant 5 : index
    %c0_45 = arith.constant 0 : index
    %c0_46 = arith.constant 0 : index
    %70 = vector.load %arg3[%c5_44, %c0_45, %c0_46] : memref<8x1x128xf32, #tpu.memory_space<vmem>>, vector<1x1x128xf32>
    %71 = vector.shape_cast %70 : vector<1x1x128xf32> to vector<1x128xf32>
    %72 = vector.broadcast %71 : vector<1x128xf32> to vector<8x128xf32>
    %73 = arith.addf %69, %72 : vector<8x128xf32>
    %cst_47 = arith.constant 0.000000e+00 : f32
    %74 = vector.broadcast %cst_47 : f32 to vector<8x128xf32>
    %75 = arith.cmpf ogt, %73, %74 : vector<8x128xf32>
    %cst_48 = arith.constant 0.00999999977 : f32
    %76 = vector.broadcast %cst_48 : f32 to vector<8x128xf32>
    %77 = arith.mulf %76, %73 : vector<8x128xf32>
    %78 = arith.select %75, %73, %77 : vector<8x128xi1>, vector<8x128xf32>
    %79 = arith.truncf %78 : vector<8x128xf32> to vector<8x128xbf16>
    %c6 = arith.constant 6 : index
    %c0_49 = arith.constant 0 : index
    %c0_50 = arith.constant 0 : index
    %80 = vector.load %arg2[%c6, %c0_49, %c0_50] : memref<8x128x128xbf16, #tpu.memory_space<vmem>>, vector<1x128x128xbf16>
    %81 = vector.shape_cast %80 : vector<1x128x128xbf16> to vector<128x128xbf16>
    %cst_51 = arith.constant dense<0.000000e+00> : vector<8x128xf32>
    %82 = tpu.matmul %79, %81, %cst_51 {dimension_numbers = #tpu.dot_dimension_numbers<[1], [0], [0], [1], [0, 0, 1, 1], [], []>} : vector<8x128xbf16>, vector<128x128xbf16>, vector<8x128xf32> -> vector<8x128xf32>
    %c6_52 = arith.constant 6 : index
    %c0_53 = arith.constant 0 : index
    %c0_54 = arith.constant 0 : index
    %83 = vector.load %arg3[%c6_52, %c0_53, %c0_54] : memref<8x1x128xf32, #tpu.memory_space<vmem>>, vector<1x1x128xf32>
    %84 = vector.shape_cast %83 : vector<1x1x128xf32> to vector<1x128xf32>
    %85 = vector.broadcast %84 : vector<1x128xf32> to vector<8x128xf32>
    %86 = arith.addf %82, %85 : vector<8x128xf32>
    %cst_55 = arith.constant 0.000000e+00 : f32
    %87 = vector.broadcast %cst_55 : f32 to vector<8x128xf32>
    %88 = arith.cmpf ogt, %86, %87 : vector<8x128xf32>
    %cst_56 = arith.constant 0.00999999977 : f32
    %89 = vector.broadcast %cst_56 : f32 to vector<8x128xf32>
    %90 = arith.mulf %89, %86 : vector<8x128xf32>
    %91 = arith.select %88, %86, %90 : vector<8x128xi1>, vector<8x128xf32>
    %92 = arith.truncf %91 : vector<8x128xf32> to vector<8x128xbf16>
    %c7 = arith.constant 7 : index
    %c0_57 = arith.constant 0 : index
    %c0_58 = arith.constant 0 : index
    %93 = vector.load %arg2[%c7, %c0_57, %c0_58] : memref<8x128x128xbf16, #tpu.memory_space<vmem>>, vector<1x128x128xbf16>
    %94 = vector.shape_cast %93 : vector<1x128x128xbf16> to vector<128x128xbf16>
    %cst_59 = arith.constant dense<0.000000e+00> : vector<8x128xf32>
    %95 = tpu.matmul %92, %94, %cst_59 {dimension_numbers = #tpu.dot_dimension_numbers<[1], [0], [0], [1], [0, 0, 1, 1], [], []>} : vector<8x128xbf16>, vector<128x128xbf16>, vector<8x128xf32> -> vector<8x128xf32>
    %c7_60 = arith.constant 7 : index
    %c0_61 = arith.constant 0 : index
    %c0_62 = arith.constant 0 : index
    %96 = vector.load %arg3[%c7_60, %c0_61, %c0_62] : memref<8x1x128xf32, #tpu.memory_space<vmem>>, vector<1x1x128xf32>
    %97 = vector.shape_cast %96 : vector<1x1x128xf32> to vector<1x128xf32>
    %98 = vector.broadcast %97 : vector<1x128xf32> to vector<8x128xf32>
    %99 = arith.addf %95, %98 : vector<8x128xf32>
    %100 = vector.extract_strided_slice %99 {offsets = [0, 0], sizes = [8, 16], strides = [1, 1]} : vector<8x128xf32> to vector<8x16xf32>
    %c0_63 = arith.constant 0 : index
    %c0_64 = arith.constant 0 : index
    %101 = vector.load %arg4[%c0_63, %c0_64] : memref<8x16xf32, #tpu.memory_space<vmem>>, vector<8x16xf32>
    tpu.vector_store %arg4[%c0_63, %c0_64], %100 {strides = array<i32>} : memref<8x16xf32, #tpu.memory_space<vmem>>, vector<8x16xf32>,
    return
  }
  func.func @transform_0(%arg0: i32) -> (i32, i32) {
    %c0_i32 = arith.constant 0 : i32
    %c0_i32_0 = arith.constant 0 : i32
    return %arg0, %c0_i32 : i32, i32
  }
  func.func @transform_1(%arg0: i32) -> (i32, i32, i32) {
    %c0_i32 = arith.constant 0 : i32
    %c0_i32_0 = arith.constant 0 : i32
    %c0_i32_1 = arith.constant 0 : i32
    %c0_i32_2 = arith.constant 0 : i32
    return %c0_i32, %c0_i32_0, %c0_i32_1 : i32, i32, i32
  }
  func.func @transform_2(%arg0: i32) -> (i32, i32, i32) {
    %c0_i32 = arith.constant 0 : i32
    %c0_i32_0 = arith.constant 0 : i32
    %c0_i32_1 = arith.constant 0 : i32
    %c0_i32_2 = arith.constant 0 : i32
    return %c0_i32, %c0_i32_0, %c0_i32_1 : i32, i32, i32
  }
  func.func @transform_3(%arg0: i32) -> (i32, i32) {
    %c0_i32 = arith.constant 0 : i32
    %c0_i32_0 = arith.constant 0 : i32
    return %arg0, %c0_i32 : i32, i32
  }
}

</mosaic_0001>

<bundles_post_ra>
// kernel: tpu_custom_call.1
= control target key start
LH: loop header
LB: loop body
LE: loop exit
PB: predicated region body
PF: predicated region fallthrough
CT: control target
= control target key end

     0   :  { %8 = vsyncpa [#allocation3], 0  ;;  %s1499_s0 = inlined_call_operand.hbm [shape: f32[8,16], index: 0, kind: input, shape index: {}]   ;;  %s1500_s1 = inlined_call_operand.hbm [shape: bf16[8,128,128], index: 1, kind: input, shape index: {}]   ;;  %s1501_s2 = inlined_call_operand.hbm [shape: f32[8,1,128], index: 2, kind: input, shape index: {}]   ;;  %s1502_s3 = inlined_call_operand.hbm [shape: f32[8,16], index: 3, kind: output, shape index: {}]  }
   0x1   :  { %9 = vsyncpa [#allocation6], 0 }
   0x2   :  { %10 = vsyncpa [#allocation4], 0  ;;  %s1382_s12 = smov [#allocation5]  }
   0x3   :  { %s26_s13 = sshll.u32 %s1382_s12, 4  ;;  %s27_s13 = int_to_ptr.vmem [resolvable:$true] %s26_s13 }
   0x4   :  { %s1304_s14 = scalar_lea.vmem %s27_s13, 8192  ;;  %p1309_p1 = scmp.lt.s32.totalorder %s27_s13, %s27_s13 }
   0x5   :  { %p1305_p0 = scmp.ne.s32.totalorder %s27_s13, %s1304_s14  ;;  %p1310_p2 = scmp.lt.s32.totalorder %s1304_s14, %s1304_s14 }
   0x7   :  { %p1311_p3 = por %p1310_p2, %p1309_p1 }
   0x9   :  { %p1312_p4 = pnand %p1311_p3, %p1305_p0 }
   0xb   :  { %1315 = shalt.err (!%p1312_p4)
}
   0xc   :  { %s1383_s15 = smov 64   ;;  %s1384_s16 = smov 4  }
   0xd   :  { %32 = dma.hbm_to_vmem [thread:$0]  %s1500_s1, 8192, %s27_s13, [#allocation6], %s1383_s15, %s1383_s15, %s1384_s16  }
   0xe   :  { %s1385_s19 = smov [#allocation2]   ;;  %s1386_s21 = smov [#allocation7]  }
   0xf   :  { %s17_s20 = sshll.u32 %s1385_s19, 4  ;;  %s38_s22 = sshll.u32 %s1386_s21, 4  ;;  %s18_s20 = int_to_ptr.vmem [resolvable:$true] %s17_s20  ;;  %s39_s22 = int_to_ptr.vmem [resolvable:$true] %s38_s22 }
  0x10   :  { %s1324_s23 = scalar_lea.vmem %s18_s20, 128  ;;  %p1329_p6 = scmp.lt.s32.totalorder %s18_s20, %s18_s20 }
  0x11   :  { %p1325_p5 = scmp.ne.s32.totalorder %s18_s20, %s1324_s23  ;;  %p1330_p7 = scmp.lt.s32.totalorder %s1324_s23, %s1324_s23 }
  0x13   :  { %p1331_p8 = por %p1330_p7, %p1329_p6 }
  0x15   :  { %p1332_p9 = pnand %p1331_p8, %p1325_p5 }
  0x17   :  { %1335 = shalt.err (!%p1332_p9)
}
  0x18   :  { %20 = dma.hbm_to_vmem [thread:$0]  %s1499_s0, 128, %s18_s20, [#allocation3]  }
  0x19   :  { %s1344_s26 = scalar_lea.vmem %s39_s22, 128  ;;  %p1349_p11 = scmp.lt.s32.totalorder %s39_s22, %s39_s22 }
  0x1a   :  { %p1345_p10 = scmp.ne.s32.totalorder %s39_s22, %s1344_s26  ;;  %p1350_p12 = scmp.lt.s32.totalorder %s1344_s26, %s1344_s26 }
  0x1c   :  { %p1351_p13 = por %p1350_p12, %p1349_p11 }
  0x1e   :  { %p1352_p0 = pnand %p1351_p13, %p1345_p10 }
  0x20   :  { %1355 = shalt.err (!%p1352_p0)
}
  0x21   :  { %s1387_s1 = smov 16   ;;  %s1388_s27 = smov 1  }
  0x22   :  { %44 = dma.hbm_to_vmem [thread:$0]  %s1501_s2, 128, %s39_s22, [#allocation6], %s1387_s1, %s1387_s1, %s1388_s27  }
  0x23   :  { %1376 = dma.done.wait [#allocation3], 128  }
  0x24   :  { %1377 = vsyncadd [#allocation3], 4294967168 }
  0x25   :  { %1378 = dma.done.wait [#allocation6], 8320  }
  0x26   :  { %1379 = vsyncadd [#allocation6], 4294958976  ;;  %v1389_v0 = vmov 0.0   ;;  %vm1390_vm0 = vmmov 0   ;;  %v1239_v1 = vld [vmem:[#allocation5] sm:$0xff]   ;;  %v55_v2 = vld [vmem:[#allocation2] sm:$0xff] }
  0x27   :  { %1083 = vmatprep.subr.bf16.mxu0 %v1389_v0  ;;  %1085 = vmatprep.mubr.msk.bf16.mxu0 %vm1390_vm0, %v1389_v0  ;;  %v56_v3 = vpack.c.bf16 %v55_v2, %v55_v2  ;;  %vm72_vm1 = vcmask 130048   ;;  %v1240_v4 = vld [vmem:[#allocation5 + $0x78] sm:$0xff]   ;;  %v1241_v5 = vld [vmem:[#allocation5 + $0x70] sm:$0xff]   ;;  %v1242_v6 = vld [vmem:[#allocation5 + $0x68] sm:$0xff]   ;;  %s1391_s0 = smov [#allocation8]  }
  0x28   :  { %1089 = vmatprep.subr.bf16.mxu1 %v1389_v0  ;;  %1105 = vmatprep.mubr.msk.bf16.mxu1 %vm1390_vm0, %v1389_v0  ;;  %v1243_v7 = vld [vmem:[#allocation5 + $0x60] sm:$0xff]   ;;  %v1244_v8 = vld [vmem:[#allocation5 + $0x58] sm:$0xff]   ;;  %v1245_v9 = vld [vmem:[#allocation5 + $0x50] sm:$0xff]   ;;  %s942_s2 = sshll.u32 %s1391_s0, 4  ;;  %s943_s2 = int_to_ptr.vmem [resolvable:$true] %s942_s2 }
  0x29   :  { %1084 = vmatpush3.bf16.msra.mxu0 %v1239_v1  ;;  %1090 = vmatpush3.bf16.msra.mxu1 %v1240_v4  ;;  %v1246_v10 = vld [vmem:[#allocation5 + $0x48] sm:$0xff]   ;;  %v1247_v11 = vld [vmem:[#allocation5 + $0x40] sm:$0xff]   ;;  %v1248_v12 = vld [vmem:[#allocation5 + $0xb8] sm:$0xff]   ;;  %s1356_s30 = scalar_lea.vmem %s943_s2, 128  ;;  %p1361_p2 = scmp.lt.s32.totalorder %s943_s2, %s943_s2 }
  0x2a   :  { %1109 = vmatprep.subr.bf16.mxu0 %v1389_v0  ;;  %1091 = vmatprep.subr.bf16.mxu1 %v1389_v0  ;;  %v1249_v13 = vld [vmem:[#allocation5 + $0xb0] sm:$0xff]   ;;  %v1250_v14 = vld [vmem:[#allocation5 + $0xa8] sm:$0xff]   ;;  %v1251_v15 = vld [vmem:[#allocation5 + $0xa0] sm:$0xff]   ;;  %p1357_p1 = scmp.ne.s32.totalorder %s943_s2, %s1356_s30  ;;  %p1362_p3 = scmp.lt.s32.totalorder %s1356_s30, %s1356_s30 }
  0x2b   :  { %v1252_v16 = vld [vmem:[#allocation5 + $0x98] sm:$0xff]   ;;  %v1253_v17 = vld [vmem:[#allocation5 + $0x90] sm:$0xff]   ;;  %v952_v18 = vld [vmem:[#allocation7] ss:$0 sm:$0xff] }
  0x2c   :  { %1086 = vmatmul.mubr.msk.bf16.vlgmr.msra.gmra.mxu0 %vm72_vm1, %v56_v3  ;;  %v1254_v27 = vld [vmem:[#allocation5 + $0x88] sm:$0xff]   ;;  %v1255_v28 = vld [vmem:[#allocation5 + $0x80] sm:$0xff]   ;;  %v1256_v29 = vld [vmem:[#allocation5 + $0xf8] sm:$0xff]   ;;  %p1363_p4 = por %p1362_p3, %p1361_p2 }
  0x2d   :  { %1125 = vmatprep.mubr.msk.bf16.mxu0 %vm1390_vm0, %v1389_v0  ;;  %1092 = vmatpush3.bf16.msra.mxu1 %v1241_v5  ;;  %v1257_v30 = vld [vmem:[#allocation5 + $0xf0] sm:$0xff]   ;;  %v1258_v31 = vld [vmem:[#allocation5 + $0xe8] sm:$0xff]   ;;  %v1259_v32 = vld [vmem:[#allocation5 + $0xe0] sm:$0xff]  }
  0x2e   :  { %1093 = vmatprep.subr.bf16.mxu1 %v1389_v0  ;;  %1110 = vmatpush3.bf16.msra.mxu0 %v1248_v12  ;;  %v1260_v33 = vld [vmem:[#allocation5 + $0xd8] sm:$0xff]   ;;  %v1261_v34 = vld [vmem:[#allocation5 + $0xd0] sm:$0xff]   ;;  %v955_v35 = vld [vmem:[#allocation7 + $0x1] ss:$0 sm:$0xff]  ;;  %p1364_p5 = pnand %p1363_p4, %p1357_p1 }
  0x2f   :  { %1111 = vmatprep.subr.bf16.mxu0 %v1389_v0  ;;  %v1262_v44 = vld [vmem:[#allocation5 + $0xc8] sm:$0xff]   ;;  %v1263_v45 = vld [vmem:[#allocation5 + $0xc0] sm:$0xff]   ;;  %v1264_v46 = vld [vmem:[#allocation5 + $0x138] sm:$0xff]  }
  0x30   :  { %v1265_v47 = vld [vmem:[#allocation5 + $0x130] sm:$0xff]   ;;  %v1266_v48 = vld [vmem:[#allocation5 + $0x128] sm:$0xff]   ;;  %v1267_v49 = vld [vmem:[#allocation5 + $0x120] sm:$0xff]  }
  0x31   :  { %1094 = vmatpush3.bf16.msra.mxu1 %v1242_v6  ;;  %v1268_v50 = vld [vmem:[#allocation5 + $0x118] sm:$0xff]   ;;  %v1269_v51 = vld [vmem:[#allocation5 + $0x110] sm:$0xff]   ;;  %v964_v52 = vld [vmem:[#allocation7 + $0x2] ss:$0 sm:$0xff] }
  0x32   :  { %1095 = vmatprep.subr.bf16.mxu1 %v1389_v0  ;;  %1112 = vmatpush3.bf16.msra.mxu0 %v1249_v13  ;;  %v1270_v61 = vld [vmem:[#allocation5 + $0x108] sm:$0xff]   ;;  %v1271_v62 = vld [vmem:[#allocation5 + $0x100] sm:$0xff]   ;;  %v1272_v63 = vld [vmem:[#allocation5 + $0x178] sm:$0xff]  }
  0x33   :  { %1113 = vmatprep.subr.bf16.mxu0 %v1389_v0  ;;  %v1273_v1 = vld [vmem:[#allocation5 + $0x170] sm:$0xff]   ;;  %v1274_v2 = vld [vmem:[#allocation5 + $0x168] sm:$0xff]   ;;  %v1275_v3 = vld [vmem:[#allocation5 + $0x160] sm:$0xff]  }
  0x34   :  { %v1276_v4 = vld [vmem:[#allocation5 + $0x158] sm:$0xff]   ;;  %v1277_v5 = vld [vmem:[#allocation5 + $0x150] sm:$0xff]   ;;  %v973_v6 = vld [vmem:[#allocation7 + $0x3] ss:$0 sm:$0xff] }
  0x35   :  { %1096 = vmatpush3.bf16.msra.mxu1 %v1243_v7 }
  0x36   :  { %1097 = vmatprep.subr.bf16.mxu1 %v1389_v0  ;;  %1114 = vmatpush3.bf16.msra.mxu0 %v1250_v14 }
  0x37   :  { %1115 = vmatprep.subr.bf16.mxu0 %v1389_v0 }
  0x39   :  { %1098 = vmatpush3.bf16.msra.mxu1 %v1244_v8 }
  0x3a   :  { %1099 = vmatprep.subr.bf16.mxu1 %v1389_v0  ;;  %1116 = vmatpush3.bf16.msra.mxu0 %v1251_v15  ;;  %v1278_v15 = vld [vmem:[#allocation5 + $0x148] sm:$0xff]  }
  0x3b   :  { %1117 = vmatprep.subr.bf16.mxu0 %v1389_v0 }
  0x3d   :  { %1100 = vmatpush3.bf16.msra.mxu1 %v1245_v9 }
  0x3e   :  { %1101 = vmatprep.subr.bf16.mxu1 %v1389_v0  ;;  %1118 = vmatpush3.bf16.msra.mxu0 %v1252_v16  ;;  %v1279_v16 = vld [vmem:[#allocation5 + $0x140] sm:$0xff]  }
  0x3f   :  { %1119 = vmatprep.subr.bf16.mxu0 %v1389_v0 }
  0x41   :  { %1102 = vmatpush3.bf16.msra.mxu1 %v1246_v10 }
  0x42   :  { %1103 = vmatprep.subr.bf16.mxu1 %v1389_v0  ;;  %1120 = vmatpush3.bf16.msra.mxu0 %v1253_v17  ;;  %v1280_v17 = vld [vmem:[#allocation5 + $0x1b8] sm:$0xff]  }
  0x43   :  { %1121 = vmatprep.subr.bf16.mxu0 %v1389_v0 }
  0x45   :  { %1104 = vmatpush3.bf16.msra.mxu1 %v1247_v11 }
  0x46   :  { %1129 = vmatprep.subr.bf16.mxu1 %v1389_v0  ;;  %1122 = vmatpush3.bf16.msra.mxu0 %v1254_v27 }
  0x47   :  { %1123 = vmatprep.subr.bf16.mxu0 %v1389_v0 }
  0x4a   :  { %1124 = vmatpush3.bf16.msra.mxu0 %v1255_v28 }
  0x4b   :  { %1149 = vmatprep.subr.bf16.mxu0 %v1389_v0 }
  0xec   :  { %v110_v19 = vpop.f32.mrf.mxu0 }
  0xed   :  { %v111_v20 = vadd.f32 %v952_v18, %v110_v19  ;;  %v1281_v18 = vld [vmem:[#allocation5 + $0x1b0] sm:$0xff]   ;;  %v1282_v19 = vld [vmem:[#allocation5 + $0x1a8] sm:$0xff]  }
  0xee   :  { %v1087_v21 = vpop.f32.mrf.mxu0 }
  0xef   :  { %vm116_vm2 = vcmp.gt.f32.partialorder %v111_v20, 0.0  ;;  %v117_v22 = vmul.f32 0.01, %v111_v20  ;;  %v1284_v21 = vld [vmem:[#allocation5 + $0x198] sm:$0xff]  }
  0xf0   :  { %v113_v23 = vpop.f32.mrf.mxu0 }
  0xf1   :  { %v118_v24 = vsel %vm116_vm2, %v111_v20, %v117_v22  ;;  %v1283_v20 = vld [vmem:[#allocation5 + $0x1a0] sm:$0xff]   ;;  %v1285_v22 = vld [vmem:[#allocation5 + $0x190] sm:$0xff]  }
  0xf2   :  { %v1088_v25 = vpop.f32.mrf.mxu0  ;;  %v119_v26 = vpack.c.bf16 %v118_v24, %v118_v24  ;;  %v982_v23 = vld [vmem:[#allocation7 + $0x4] ss:$0 sm:$0xff] }
  0xf4   :  { %1106 = vmatmul.mubr.bf16.vlgmr.msra.gmra.mxu1 %v119_v26 }
  0xf5   :  { %1145 = vmatprep.mubr.msk.bf16.mxu1 %vm1390_vm0, %v1389_v0  ;;  %1130 = vmatpush3.bf16.msra.mxu1 %v1256_v29 }
  0xf6   :  { %1131 = vmatprep.subr.bf16.mxu1 %v1389_v0 }
  0xf9   :  { %1132 = vmatpush3.bf16.msra.mxu1 %v1257_v30 }
  0xfa   :  { %1133 = vmatprep.subr.bf16.mxu1 %v1389_v0 }
  0xfd   :  { %1134 = vmatpush3.bf16.msra.mxu1 %v1258_v31 }
  0xfe   :  { %1135 = vmatprep.subr.bf16.mxu1 %v1389_v0 }
 0x101   :  { %1136 = vmatpush3.bf16.msra.mxu1 %v1259_v32  ;;  %v1286_v32 = vld [vmem:[#allocation5 + $0x188] sm:$0xff]  }
 0x102   :  { %1137 = vmatprep.subr.bf16.mxu1 %v1389_v0 }
 0x105   :  { %1138 = vmatpush3.bf16.msra.mxu1 %v1260_v33  ;;  %v1287_v33 = vld [vmem:[#allocation5 + $0x180] sm:$0xff]  }
 0x106   :  { %1139 = vmatprep.subr.bf16.mxu1 %v1389_v0 }
 0x109   :  { %1140 = vmatpush3.bf16.msra.mxu1 %v1261_v34  ;;  %v1288_v34 = vld [vmem:[#allocation5 + $0x1f8] sm:$0xff]  }
 0x10a   :  { %1141 = vmatprep.subr.bf16.mxu1 %v1389_v0 }
 0x10d   :  { %1142 = vmatpush3.bf16.msra.mxu1 %v1262_v44 }
 0x10e   :  { %1143 = vmatprep.subr.bf16.mxu1 %v1389_v0 }
 0x111   :  { %1144 = vmatpush3.bf16.msra.mxu1 %v1263_v45 }
 0x112   :  { %1169 = vmatprep.subr.bf16.mxu1 %v1389_v0 }
 0x1b4   :  { %v227_v36 = vpop.f32.mrf.mxu1 }
 0x1b5   :  { %v228_v37 = vadd.f32 %v955_v35, %v227_v36  ;;  %v1289_v35 = vld [vmem:[#allocation5 + $0x1f0] sm:$0xff]   ;;  %v1290_v36 = vld [vmem:[#allocation5 + $0x1e8] sm:$0xff]  }
 0x1b6   :  { %v1107_v38 = vpop.f32.mrf.mxu1 }
 0x1b7   :  { %vm233_vm3 = vcmp.gt.f32.partialorder %v228_v37, 0.0  ;;  %v234_v39 = vmul.f32 0.01, %v228_v37  ;;  %v1292_v38 = vld [vmem:[#allocation5 + $0x1d8] sm:$0xff]  }
 0x1b8   :  { %v230_v40 = vpop.f32.mrf.mxu1 }
 0x1b9   :  { %v235_v41 = vsel %vm233_vm3, %v228_v37, %v234_v39  ;;  %v1291_v37 = vld [vmem:[#allocation5 + $0x1e0] sm:$0xff]   ;;  %v1293_v39 = vld [vmem:[#allocation5 + $0x1d0] sm:$0xff]  }
 0x1ba   :  { %v236_v42 = vpack.c.bf16 %v235_v41, %v235_v41  ;;  %v1108_v43 = vpop.f32.mrf.mxu1  ;;  %v991_v40 = vld [vmem:[#allocation7 + $0x5] ss:$0 sm:$0xff] }
 0x1bc   :  { %1126 = vmatmul.mubr.bf16.vlgmr.msra.gmra.mxu0 %v236_v42 }
 0x1bd   :  { %1165 = vmatprep.mubr.msk.bf16.mxu0 %vm1390_vm0, %v1389_v0  ;;  %1150 = vmatpush3.bf16.msra.mxu0 %v1264_v46 }
 0x1be   :  { %1151 = vmatprep.subr.bf16.mxu0 %v1389_v0 }
 0x1c1   :  { %1152 = vmatpush3.bf16.msra.mxu0 %v1265_v47 }
 0x1c2   :  { %1153 = vmatprep.subr.bf16.mxu0 %v1389_v0 }
 0x1c5   :  { %1154 = vmatpush3.bf16.msra.mxu0 %v1266_v48 }
 0x1c6   :  { %1155 = vmatprep.subr.bf16.mxu0 %v1389_v0 }
 0x1c9   :  { %1156 = vmatpush3.bf16.msra.mxu0 %v1267_v49  ;;  %v1294_v49 = vld [vmem:[#allocation5 + $0x1c8] sm:$0xff]  }
 0x1ca   :  { %1157 = vmatprep.subr.bf16.mxu0 %v1389_v0 }
 0x1cd   :  { %1158 = vmatpush3.bf16.msra.mxu0 %v1268_v50  ;;  %v1295_v50 = vld [vmem:[#allocation5 + $0x1c0] sm:$0xff]  }
 0x1ce   :  { %1159 = vmatprep.subr.bf16.mxu0 %v1389_v0 }
 0x1d1   :  { %1160 = vmatpush3.bf16.msra.mxu0 %v1269_v51  ;;  %v1000_v51 = vld [vmem:[#allocation7 + $0x6] ss:$0 sm:$0xff] }
 0x1d2   :  { %1161 = vmatprep.subr.bf16.mxu0 %v1389_v0 }
 0x1d5   :  { %1162 = vmatpush3.bf16.msra.mxu0 %v1270_v61 }
 0x1d6   :  { %1163 = vmatprep.subr.bf16.mxu0 %v1389_v0 }
 0x1d9   :  { %1164 = vmatpush3.bf16.msra.mxu0 %v1271_v62 }
 0x1da   :  { %1189 = vmatprep.subr.bf16.mxu0 %v1389_v0 }
 0x27c   :  { %v344_v53 = vpop.f32.mrf.mxu0 }
 0x27d   :  { %v345_v54 = vadd.f32 %v964_v52, %v344_v53 }
 0x27e   :  { %v1127_v55 = vpop.f32.mrf.mxu0 }
 0x27f   :  { %vm350_vm4 = vcmp.gt.f32.partialorder %v345_v54, 0.0  ;;  %v351_v56 = vmul.f32 0.01, %v345_v54 }
 0x280   :  { %v347_v57 = vpop.f32.mrf.mxu0 }
 0x281   :  { %v352_v58 = vsel %vm350_vm4, %v345_v54, %v351_v56 }
 0x282   :  { %v353_v59 = vpack.c.bf16 %v352_v58, %v352_v58  ;;  %v1128_v60 = vpop.f32.mrf.mxu0 }
 0x283   :  { %v1009_v60 = vld [vmem:[#allocation7 + $0x7] ss:$0 sm:$0xff] }
 0x284   :  { %1146 = vmatmul.mubr.bf16.vlgmr.msra.gmra.mxu1 %v353_v59 }
 0x285   :  { %1185 = vmatprep.mubr.msk.bf16.mxu1 %vm1390_vm0, %v1389_v0  ;;  %1170 = vmatpush3.bf16.msra.mxu1 %v1272_v63 }
 0x286   :  { %1171 = vmatprep.subr.bf16.mxu1 %v1389_v0 }
 0x289   :  { %1172 = vmatpush3.bf16.msra.mxu1 %v1273_v1 }
 0x28a   :  { %1173 = vmatprep.subr.bf16.mxu1 %v1389_v0 }
 0x28d   :  { %1174 = vmatpush3.bf16.msra.mxu1 %v1274_v2 }
 0x28e   :  { %1175 = vmatprep.subr.bf16.mxu1 %v1389_v0 }
 0x291   :  { %1176 = vmatpush3.bf16.msra.mxu1 %v1275_v3 }
 0x292   :  { %1177 = vmatprep.subr.bf16.mxu1 %v1389_v0 }
 0x295   :  { %1178 = vmatpush3.bf16.msra.mxu1 %v1276_v4 }
 0x296   :  { %1179 = vmatprep.subr.bf16.mxu1 %v1389_v0 }
 0x299   :  { %1180 = vmatpush3.bf16.msra.mxu1 %v1277_v5 }
 0x29a   :  { %1181 = vmatprep.subr.bf16.mxu1 %v1389_v0 }
 0x29d   :  { %1182 = vmatpush3.bf16.msra.mxu1 %v1278_v15 }
 0x29e   :  { %1183 = vmatprep.subr.bf16.mxu1 %v1389_v0 }
 0x2a1   :  { %1184 = vmatpush3.bf16.msra.mxu1 %v1279_v16 }
 0x2a2   :  { %1209 = vmatprep.subr.bf16.mxu1 %v1389_v0 }
 0x344   :  { %v461_v7 = vpop.f32.mrf.mxu1 }
 0x345   :  { %v462_v8 = vadd.f32 %v973_v6, %v461_v7 }
 0x346   :  { %v1147_v9 = vpop.f32.mrf.mxu1 }
 0x347   :  { %vm467_vm5 = vcmp.gt.f32.partialorder %v462_v8, 0.0  ;;  %v468_v10 = vmul.f32 0.01, %v462_v8 }
 0x348   :  { %v464_v11 = vpop.f32.mrf.mxu1 }
 0x349   :  { %v469_v12 = vsel %vm467_vm5, %v462_v8, %v468_v10 }
 0x34a   :  { %v470_v13 = vpack.c.bf16 %v469_v12, %v469_v12  ;;  %v1148_v14 = vpop.f32.mrf.mxu1 }
 0x34c   :  { %1166 = vmatmul.mubr.bf16.vlgmr.msra.gmra.mxu0 %v470_v13 }
 0x34d   :  { %1205 = vmatprep.mubr.msk.bf16.mxu0 %vm1390_vm0, %v1389_v0  ;;  %1190 = vmatpush3.bf16.msra.mxu0 %v1280_v17 }
 0x34e   :  { %1191 = vmatprep.subr.bf16.mxu0 %v1389_v0 }
 0x351   :  { %1192 = vmatpush3.bf16.msra.mxu0 %v1281_v18 }
 0x352   :  { %1193 = vmatprep.subr.bf16.mxu0 %v1389_v0 }
 0x355   :  { %1194 = vmatpush3.bf16.msra.mxu0 %v1282_v19 }
 0x356   :  { %1195 = vmatprep.subr.bf16.mxu0 %v1389_v0 }
 0x359   :  { %1196 = vmatpush3.bf16.msra.mxu0 %v1283_v20 }
 0x35a   :  { %1197 = vmatprep.subr.bf16.mxu0 %v1389_v0 }
 0x35d   :  { %1198 = vmatpush3.bf16.msra.mxu0 %v1284_v21 }
 0x35e   :  { %1199 = vmatprep.subr.bf16.mxu0 %v1389_v0 }
 0x361   :  { %1200 = vmatpush3.bf16.msra.mxu0 %v1285_v22 }
 0x362   :  { %1201 = vmatprep.subr.bf16.mxu0 %v1389_v0 }
 0x365   :  { %1202 = vmatpush3.bf16.msra.mxu0 %v1286_v32 }
 0x366   :  { %1203 = vmatprep.subr.bf16.mxu0 %v1389_v0 }
 0x369   :  { %1204 = vmatpush3.bf16.msra.mxu0 %v1287_v33 }
 0x40c   :  { %v578_v24 = vpop.f32.mrf.mxu0 }
 0x40d   :  { %v579_v25 = vadd.f32 %v982_v23, %v578_v24 }
 0x40e   :  { %v1167_v26 = vpop.f32.mrf.mxu0 }
 0x40f   :  { %vm584_vm6 = vcmp.gt.f32.partialorder %v579_v25, 0.0  ;;  %v585_v27 = vmul.f32 0.01, %v579_v25 }
 0x410   :  { %v581_v28 = vpop.f32.mrf.mxu0 }
 0x411   :  { %v586_v29 = vsel %vm584_vm6, %v579_v25, %v585_v27 }
 0x412   :  { %v587_v30 = vpack.c.bf16 %v586_v29, %v586_v29  ;;  %v1168_v31 = vpop.f32.mrf.mxu0 }
 0x414   :  { %1186 = vmatmul.mubr.bf16.vlgmr.msra.gmra.mxu1 %v587_v30 }
 0x415   :  { %1225 = vmatprep.mubr.msk.bf16.mxu1 %vm1390_vm0, %v1389_v0  ;;  %1210 = vmatpush3.bf16.msra.mxu1 %v1288_v34 }
 0x416   :  { %1211 = vmatprep.subr.bf16.mxu1 %v1389_v0 }
 0x419   :  { %1212 = vmatpush3.bf16.msra.mxu1 %v1289_v35 }
 0x41a   :  { %1213 = vmatprep.subr.bf16.mxu1 %v1389_v0 }
 0x41d   :  { %1214 = vmatpush3.bf16.msra.mxu1 %v1290_v36 }
 0x41e   :  { %1215 = vmatprep.subr.bf16.mxu1 %v1389_v0 }
 0x421   :  { %1216 = vmatpush3.bf16.msra.mxu1 %v1291_v37 }
 0x422   :  { %1217 = vmatprep.subr.bf16.mxu1 %v1389_v0 }
 0x425   :  { %1218 = vmatpush3.bf16.msra.mxu1 %v1292_v38 }
 0x426   :  { %1219 = vmatprep.subr.bf16.mxu1 %v1389_v0 }
 0x429   :  { %1220 = vmatpush3.bf16.msra.mxu1 %v1293_v39 }
 0x42a   :  { %1221 = vmatprep.subr.bf16.mxu1 %v1389_v0 }
 0x42d   :  { %1222 = vmatpush3.bf16.msra.mxu1 %v1294_v49 }
 0x42e   :  { %1223 = vmatprep.subr.bf16.mxu1 %v1389_v0 }
 0x431   :  { %1224 = vmatpush3.bf16.msra.mxu1 %v1295_v50 }
 0x4d4   :  { %v695_v41 = vpop.f32.mrf.mxu1 }
 0x4d5   :  { %v696_v42 = vadd.f32 %v991_v40, %v695_v41 }
 0x4d6   :  { %v1187_v43 = vpop.f32.mrf.mxu1 }
 0x4d7   :  { %vm701_vm7 = vcmp.gt.f32.partialorder %v696_v42, 0.0  ;;  %v702_v44 = vmul.f32 0.01, %v696_v42 }
 0x4d8   :  { %v698_v45 = vpop.f32.mrf.mxu1 }
 0x4d9   :  { %v703_v46 = vsel %vm701_vm7, %v696_v42, %v702_v44 }
 0x4da   :  { %v704_v47 = vpack.c.bf16 %v703_v46, %v703_v46  ;;  %v1188_v48 = vpop.f32.mrf.mxu1 }
 0x4dc   :  { %1206 = vmatmul.mubr.bf16.vlgmr.msra.gmra.mxu0 %v704_v47 }
 0x59c   :  { %v812_v52 = vpop.f32.mrf.mxu0 }
 0x59d   :  { %v813_v53 = vadd.f32 %v1000_v51, %v812_v52 }
 0x59e   :  { %v1207_v54 = vpop.f32.mrf.mxu0 }
 0x59f   :  { %vm818_vm8 = vcmp.gt.f32.partialorder %v813_v53, 0.0  ;;  %v819_v55 = vmul.f32 0.01, %v813_v53 }
 0x5a0   :  { %v815_v56 = vpop.f32.mrf.mxu0 }
 0x5a1   :  { %v820_v57 = vsel %vm818_vm8, %v813_v53, %v819_v55 }
 0x5a2   :  { %v821_v58 = vpack.c.bf16 %v820_v57, %v820_v57  ;;  %v1208_v59 = vpop.f32.mrf.mxu0 }
 0x5a4   :  { %1226 = vmatmul.mubr.bf16.vlgmr.msra.gmra.mxu1 %v821_v58 }
 0x664   :  { %v929_v61 = vpop.f32.mrf.mxu1 }
 0x665   :  { %v930_v62 = vadd.f32 %v1009_v60, %v929_v61 }
 0x666   :  { %v1227_v0 = vpop.f32.mrf.mxu1 }
 0x667   :  { %935 = vst.msk [vmem:[#allocation8] sm:$0xff] %vm72_vm1, %v930_v62 }
 0x668   :  { %v932_v63 = vpop.f32.mrf.mxu1 }
 0x669   :  { %1367 = shalt.err (!%p1364_p5)
}
 0x66a   :  { %945 = dma.vmem_to_hbm [thread:$0]  %s943_s2, 128, %s1502_s3, [#allocation4]   ;;  %v1228_v1 = vpop.f32.mrf.mxu1 }
 0x66b   :  { %1380 = dma.done.wait [#allocation4], 128  }
 0x66c   :  { %1381 = vsyncadd [#allocation4], 4294967168 }
 0x66d   :  { %949 = vsyncpa [#allocation3], 1 }
 0x66e   :  { %950 = vsyncpa [#allocation6], 1 }
 0x66f   :  { %951 = vsyncpa [#allocation4], 1 }

</bundles_post_ra>
